<compile_context>
chip_gen: v5e
topology: v5e:2x2
jax: 0.10.0
libtpu: 0.0.40
codegen_flags: <defaults>
</compile_context>

<pallas_src>
import functools

import jax
import jax.numpy as jnp
from jax.experimental import pallas as pl
from jax.experimental.pallas import tpu as pltpu

_MIB = 1024 * 1024
_VMEM_BUDGET = 48 * _MIB          # stay well inside v7x's 64 MiB per-core VMEM
_RESIDENT_WEIGHT_LIMIT = 24 * _MIB


def _round_up(x, m):
    return ((x + m - 1) // m) * m


# ---------------------------------------------------------------------------
# Path A: full (pre-transposed) weight resident in VMEM, 1-D grid over rows.
# ---------------------------------------------------------------------------
def _linear_m_resident_kernel(x_ref, wt_ref, b_ref, o_ref):
    # x_ref : (tm, Ip)   input row tile
    # wt_ref: (Ip, Op)   pre-transposed weight (no in-kernel transpose)
    # b_ref : (1, Op)    bias, already float32
    # o_ref : (tm, Op)
    acc = jnp.dot(x_ref[...], wt_ref[...], preferred_element_type=jnp.float32)
    o_ref[...] = (acc + b_ref[...]).astype(o_ref.dtype)


# ---------------------------------------------------------------------------
# Path B: 3-D tiled matmul with f32 accumulator scratch (weight too big to
# keep resident -- important on v7x's smaller VMEM).
# ---------------------------------------------------------------------------
def _linear_m_tiled_kernel(x_ref, wt_ref, b_ref, o_ref, acc_ref):
    k = pl.program_id(2)

    @pl.when(k == 0)
    def _():
        acc_ref[...] = jnp.zeros_like(acc_ref)

    acc_ref[...] += jnp.dot(x_ref[...], wt_ref[...],
                            preferred_element_type=jnp.float32)

    @pl.when(k == pl.num_programs(2) - 1)
    def _():
        o_ref[...] = (acc_ref[...] + b_ref[...]).astype(o_ref.dtype)


def prepare_linear_m_weight(w, indim):
    """Split bias column, transpose, pad to lane-dense (Ip, Op) / (1, Op).

    In a real model call this once per parameter update and reuse the result;
    here it is folded into the (jitted) forward for a self-contained script.
    """
    outdim = w.shape[0]
    Ip = _round_up(max(indim, 1), 128)
    Op = _round_up(max(outdim, 1), 128)
    w_t = jnp.zeros((Ip, Op), dtype=w.dtype).at[:indim, :outdim].set(
        w[:, :indim].T)
    bias = jnp.zeros((1, Op), dtype=jnp.float32).at[0, :outdim].set(
        w[:, indim].astype(jnp.float32))
    return w_t, bias


def _maybe_pad_rows(x2, M, I, Mp, Ip, dtype):
    """Pad (M, I) -> (Mp, Ip) only if needed (avoids an extra HBM copy)."""
    if Mp == M and Ip == I:
        return x2
    return jnp.zeros((Mp, Ip), dtype=dtype).at[:M, :I].set(x2)


@functools.partial(jax.jit, static_argnames=("force_tiled",))
def linear_m(x, w, force_tiled=False):
    """x: (B, H, indim), w: (outdim, indim+1)  ->  (B, H, outdim)."""
    B, H, I = x.shape
    O, Ip1 = w.shape
    assert Ip1 == I + 1

    M = B * H
    x_item = x.dtype.itemsize
    w_item = w.dtype.itemsize

    Ip = _round_up(max(I, 1), 128)
    Op = _round_up(max(O, 1), 128)
    weight_bytes = Ip * Op * w_item

    w_t, bias = prepare_linear_m_weight(w, I)
    x2 = x.reshape(M, I)

    use_resident = (not force_tiled) and weight_bytes <= _RESIDENT_WEIGHT_LIMIT

    if use_resident:
        # Largest row tile whose double-buffered working set fits the budget.
        tm = 8
        for cand in (1024, 512, 256, 128, 64, 32, 16, 8):
            need = (2 * cand * Ip * x_item        # x tiles (double buffered)
                    + weight_bytes                # resident weight
                    + 2 * Op * 4                  # bias
                    + 2 * cand * Op * x_item)     # out tiles (double buffered)
            if need <= _VMEM_BUDGET:
                tm = cand
                break
        tm = min(tm, _round_up(M, 8))
        Mp = _round_up(M, tm)

        x_p = _maybe_pad_rows(x2, M, I, Mp, Ip, x.dtype)

        need = (2 * tm * Ip * x_item + weight_bytes + 2 * Op * 4
                + 2 * tm * Op * x_item)
        vmem_limit = int(min(max(2 * need, 32 * _MIB), 56 * _MIB))

        out_p = pl.pallas_call(
            _linear_m_resident_kernel,
            out_shape=jax.ShapeDtypeStruct((Mp, Op), x.dtype),
            grid_spec=pltpu.PrefetchScalarGridSpec(
                num_scalar_prefetch=0,
                grid=(Mp // tm,),
                in_specs=[
                    pl.BlockSpec((tm, Ip), lambda i: (i, 0)),   # x row tile
                    pl.BlockSpec((Ip, Op), lambda i: (0, 0)),   # resident W^T
                    pl.BlockSpec((1, Op), lambda i: (0, 0)),    # bias (f32)
                ],
                out_specs=pl.BlockSpec((tm, Op), lambda i: (i, 0)),
            ),
            compiler_params=pltpu.CompilerParams(
                dimension_semantics=("parallel",),
                vmem_limit_bytes=vmem_limit,
            ),
        )(x_p, w_t, bias)
    else:
        # 3-D tiled path: grid = (M tiles, O tiles, K tiles), reduction last.
        tm = min(512, _round_up(M, 8))
        tn = 256 if Op % 256 == 0 else 128
        tk = 256 if Ip % 256 == 0 else 128
        Mp = _round_up(M, tm)

        x_p = _maybe_pad_rows(x2, M, I, Mp, Ip, x.dtype)

        need = (2 * (tm * tk * x_item + tk * tn * w_item + tm * tn * x_item
                     + tn * 4)
                + tm * tn * 4)
        vmem_limit = int(min(max(2 * need, 32 * _MIB), 56 * _MIB))

        out_p = pl.pallas_call(
            _linear_m_tiled_kernel,
            out_shape=jax.ShapeDtypeStruct((Mp, Op), x.dtype),
            grid_spec=pltpu.PrefetchScalarGridSpec(
                num_scalar_prefetch=0,
                grid=(Mp // tm, Op // tn, Ip // tk),
                in_specs=[
                    pl.BlockSpec((tm, tk), lambda i, j, k: (i, k)),  # x
                    pl.BlockSpec((tk, tn), lambda i, j, k: (k, j)),  # W^T
                    pl.BlockSpec((1, tn), lambda i, j, k: (0, j)),   # bias
                ],
                out_specs=pl.BlockSpec((tm, tn), lambda i, j, k: (i, j)),
                scratch_shapes=[pltpu.VMEM((tm, tn), jnp.float32)],
            ),
            compiler_params=pltpu.CompilerParams(
                dimension_semantics=("parallel", "parallel", "arbitrary"),
                vmem_limit_bytes=vmem_limit,
            ),
        )(x_p, w_t, bias)

    if Mp == M and Op == O:
        return out_p.reshape(B, H, O)
    return out_p[:M, :O].reshape(B, H, O)


def init_linear_m_params(key, indim, outdim, initzeros=False, dtype=jnp.float32):
    """Deterministic parameter init mirroring LinearM.__init__ (g_dtype -> float32)."""
    scl = 0.005
    if initzeros:
        w = scl * jnp.ones((outdim, indim + 1), dtype=dtype)
    else:
        w = scl * jax.random.normal(key, (outdim, indim + 1), dtype=dtype)
    w = w.at[:, -1].set(0.0)   # self.w[:, -1] = 0.0
    return w


if __name__ == "__main__":
    key = jax.random.PRNGKey(0)
    k_w, k_x = jax.random.split(key)

    B, H, indim, outdim = 2, 8, 32, 32

    w = init_linear_m_params(k_w, indim, outdim, initzeros=False, dtype=jnp.float32)
    x = jax.random.normal(k_x, (B, H, indim), dtype=jnp.float32)

    ref = jnp.einsum("oi,bhi->bho", w[:, :-1], x) + w[:, -1]

    # Path A (resident weight).
    out = jax.block_until_ready(linear_m(x, w))
    assert out.shape == (B, H, outdim)
    assert jnp.allclose(out, ref, atol=1e-5, rtol=1e-5)

    # Path B (3-D tiled fallback) -- exercised explicitly for correctness.
    out_tiled = jax.block_until_ready(linear_m(x, w, force_tiled=True))
    assert jnp.allclose(out_tiled, ref, atol=1e-5, rtol=1e-5)

    # Row count not a multiple of 8 -> exercises the padding path (no asserts).
    x_odd = jax.random.normal(k_x, (3, 5, indim), dtype=jnp.float32)
    ref_odd = jnp.einsum("oi,bhi->bho", w[:, :-1], x_odd) + w[:, -1]
    out_odd = jax.block_until_ready(linear_m(x_odd, w))
    assert jnp.allclose(out_odd, ref_odd, atol=1e-5, rtol=1e-5)

    print("KERNEL_OK")
</pallas_src>

<mosaic_0001>
module attributes {stable_mosaic.version = 11 : i64} {
  func.func @_linear_m_resident_kernel(%arg0: i32, %arg1: memref<16x128xf32, #tpu.memory_space<vmem>>, %arg2: memref<128x128xf32, #tpu.memory_space<vmem>>, %arg3: memref<1x128xf32, #tpu.memory_space<vmem>>, %arg4: memref<16x128xf32, #tpu.memory_space<vmem>>) attributes {dimension_semantics = [#tpu.dimension_semantics<parallel>], iteration_bounds = array<i64: 1>, scalar_prefetch = 0 : i64, scratch_operands = 0 : i64, tpu.core_type = #tpu.core_type<tc>, window_params = [{transform_indices = @transform_0, window_bounds = array<i64: 16, 128>}, {pipeline_mode = #tpu.pipeline_mode<synchronous>, transform_indices = @transform_1, window_bounds = array<i64: 128, 128>}, {pipeline_mode = #tpu.pipeline_mode<synchronous>, transform_indices = @transform_2, window_bounds = array<i64: 1, 128>}, {transform_indices = @transform_3, window_bounds = array<i64: 16, 128>}]} {
    %c0 = arith.constant 0 : index
    %c0_0 = arith.constant 0 : index
    %0 = vector.load %arg1[%c0, %c0_0] : memref<16x128xf32, #tpu.memory_space<vmem>>, vector<16x128xf32>
    %c0_1 = arith.constant 0 : index
    %c0_2 = arith.constant 0 : index
    %1 = vector.load %arg2[%c0_1, %c0_2] : memref<128x128xf32, #tpu.memory_space<vmem>>, vector<128x128xf32>
    %cst = arith.constant dense<0.000000e+00> : vector<16x128xf32>
    %2 = tpu.matmul %0, %1, %cst {dimension_numbers = #tpu.dot_dimension_numbers<[1], [0], [0], [1], [0, 0, 1, 1], [], []>} : vector<16x128xf32>, vector<128x128xf32>, vector<16x128xf32> -> vector<16x128xf32>
    %c0_3 = arith.constant 0 : index
    %c0_4 = arith.constant 0 : index
    %3 = vector.load %arg3[%c0_3, %c0_4] : memref<1x128xf32, #tpu.memory_space<vmem>>, vector<1x128xf32>
    %4 = vector.broadcast %3 : vector<1x128xf32> to vector<16x128xf32>
    %5 = arith.addf %2, %4 : vector<16x128xf32>
    %c0_5 = arith.constant 0 : index
    %c0_6 = arith.constant 0 : index
    %6 = vector.load %arg4[%c0_5, %c0_6] : memref<16x128xf32, #tpu.memory_space<vmem>>, vector<16x128xf32>
    tpu.vector_store %arg4[%c0_5, %c0_6], %5 {strides = array<i32>} : memref<16x128xf32, #tpu.memory_space<vmem>>, vector<16x128xf32>,
    return
  }
  func.func @transform_0(%arg0: i32) -> (i32, i32) {
    %c0_i32 = arith.constant 0 : i32
    %c0_i32_0 = arith.constant 0 : i32
    return %arg0, %c0_i32 : i32, i32
  }
  func.func @transform_1(%arg0: i32) -> (i32, i32) {
    %c0_i32 = arith.constant 0 : i32
    %c0_i32_0 = arith.constant 0 : i32
    %c0_i32_1 = arith.constant 0 : i32
    return %c0_i32, %c0_i32_0 : i32, i32
  }
  func.func @transform_2(%arg0: i32) -> (i32, i32) {
    %c0_i32 = arith.constant 0 : i32
    %c0_i32_0 = arith.constant 0 : i32
    %c0_i32_1 = arith.constant 0 : i32
    return %c0_i32, %c0_i32_0 : i32, i32
  }
  func.func @transform_3(%arg0: i32) -> (i32, i32) {
    %c0_i32 = arith.constant 0 : i32
    %c0_i32_0 = arith.constant 0 : i32
    return %arg0, %c0_i32 : i32, i32
  }
}

</mosaic_0001>

<bundles_post_ra>
// kernel: linear_m.1
= control target key start
LH: loop header
LB: loop body
LE: loop exit
PB: predicated region body
PF: predicated region fallthrough
CT: control target
= control target key end

     0   :  { %s165_s1 = inlined_call_operand.vmem [shape: f32[128,128], index: 1, kind: input, shape index: {}]   ;;  %s166_s2 = inlined_call_operand.vmem [shape: f32[1,128], index: 2, kind: input, shape index: {}]   ;;  %s167_s0 = inlined_call_operand.vmem [shape: f32[16,128], index: 0, kind: input, shape index: {}]   ;;  %s168_s3 = inlined_call_operand.vmem [shape: f32[16,128], index: 3, kind: output, shape index: {}]  }
   0x1   :  { %v31_v0 = vld [vmem:[%s165_s1 + $0x78] sm:$0xff]  ;;  %v30_v1 = vld [vmem:[%s165_s1 + $0x70] sm:$0xff]  ;;  %v29_v2 = vld [vmem:[%s165_s1 + $0x68] sm:$0xff] }
   0x2   :  { %36 = vmatpush.msra.mxu0 %v31_v0  ;;  %65 = vmatpush.msra.mxu1 %v31_v0  ;;  %v28_v3 = vld [vmem:[%s165_s1 + $0x60] sm:$0xff]  ;;  %v27_v4 = vld [vmem:[%s165_s1 + $0x58] sm:$0xff]  ;;  %v26_v5 = vld [vmem:[%s165_s1 + $0x50] sm:$0xff] }
   0x3   :  { %v25_v6 = vld [vmem:[%s165_s1 + $0x48] sm:$0xff]  ;;  %v24_v7 = vld [vmem:[%s165_s1 + $0x40] sm:$0xff]  ;;  %v23_v8 = vld [vmem:[%s165_s1 + $0x38] sm:$0xff] }
   0x4   :  { %37 = vmatpush.msra.mxu0 %v30_v1  ;;  %66 = vmatpush.msra.mxu1 %v30_v1  ;;  %v22_v9 = vld [vmem:[%s165_s1 + $0x30] sm:$0xff]  ;;  %v21_v10 = vld [vmem:[%s165_s1 + $0x28] sm:$0xff]  ;;  %v20_v11 = vld [vmem:[%s165_s1 + $0x20] sm:$0xff] }
   0x5   :  { %v19_v12 = vld [vmem:[%s165_s1 + $0x18] sm:$0xff]  ;;  %v18_v13 = vld [vmem:[%s165_s1 + $0x10] sm:$0xff]  ;;  %v17_v14 = vld [vmem:[%s165_s1 + $0x8] sm:$0xff] }
   0x6   :  { %38 = vmatpush.msra.mxu0 %v29_v2  ;;  %67 = vmatpush.msra.mxu1 %v29_v2  ;;  %v16_v15 = vld [vmem:[%s165_s1] sm:$0xff]  ;;  %v15_v17 = vld [vmem:[%s167_s0 + $0x8] sm:$0xff] }
   0x7   :  { %v14_v16 = vld [vmem:[%s167_s0] sm:$0xff] }
   0x8   :  { %39 = vmatpush.msra.mxu0 %v28_v3  ;;  %68 = vmatpush.msra.mxu1 %v28_v3  ;;  %v81_v18 = vld [vmem:[%s166_s2] ss:$0 sm:$0xff] }
   0xa   :  { %40 = vmatpush.msra.mxu0 %v27_v4  ;;  %69 = vmatpush.msra.mxu1 %v27_v4 }
   0xc   :  { %41 = vmatpush.msra.mxu0 %v26_v5  ;;  %70 = vmatpush.msra.mxu1 %v26_v5 }
   0xe   :  { %42 = vmatpush.msra.mxu0 %v25_v6  ;;  %71 = vmatpush.msra.mxu1 %v25_v6 }
  0x10   :  { %43 = vmatpush.msra.mxu0 %v24_v7  ;;  %72 = vmatpush.msra.mxu1 %v24_v7 }
  0x12   :  { %44 = vmatpush.msra.mxu0 %v23_v8  ;;  %73 = vmatpush.msra.mxu1 %v23_v8 }
  0x14   :  { %45 = vmatpush.msra.mxu0 %v22_v9  ;;  %74 = vmatpush.msra.mxu1 %v22_v9 }
  0x16   :  { %46 = vmatpush.msra.mxu0 %v21_v10  ;;  %75 = vmatpush.msra.mxu1 %v21_v10 }
  0x18   :  { %47 = vmatpush.msra.mxu0 %v20_v11  ;;  %76 = vmatpush.msra.mxu1 %v20_v11 }
  0x1a   :  { %48 = vmatpush.msra.mxu0 %v19_v12  ;;  %77 = vmatpush.msra.mxu1 %v19_v12 }
  0x1c   :  { %49 = vmatpush.msra.mxu0 %v18_v13  ;;  %78 = vmatpush.msra.mxu1 %v18_v13 }
  0x1e   :  { %50 = vmatpush.msra.mxu0 %v17_v14  ;;  %79 = vmatpush.msra.mxu1 %v17_v14 }
  0x20   :  { %51 = vmatpush.msra.mxu0 %v16_v15  ;;  %80 = vmatpush.msra.mxu1 %v16_v15 }
  0x21   :  { %52 = vmatmul.f32.vlgmr.msra.gmra.mxu0 %v14_v16  ;;  %55 = vmatmul.f32.vlgmr.msra.gmra.mxu1 %v15_v17 }
  0x9e   :  { %v53_v19 = vpop.f32.mrf.mxu0  ;;  %v56_v20 = vpop.f32.mrf.mxu1 }
  0x9f   :  { %v54_v21 = vadd.f32 %v81_v18, %v53_v19  ;;  %v57_v22 = vadd.f32 %v81_v18, %v56_v20 }
  0xa1   :  { %59 = vst [vmem:[%s168_s3] sm:$0xff] %v54_v21 }
  0xa2   :  { %60 = vst [vmem:[%s168_s3 + $0x8] sm:$0xff] %v57_v22 }

</bundles_post_ra>
